<compile_context>
chip_gen: v6e
topology: v6e:2x2x1
jax: 0.10.0
libtpu: 0.0.40
codegen_flags: <defaults>
</compile_context>

<pallas_src>
import functools
import math

import jax
import jax.numpy as jnp
from jax.experimental import pallas as pl
from jax.experimental.pallas import tpu as pltpu

LANE = 128                      # lane width: pad feature dims to this
ROW_TILE = 1024                 # row tile once the row count exceeds it
VMEM_LIMIT = 32 * 1024 * 1024   # explicit scoped-VMEM budget (safe on v5e/v6e/v7x)


def _round_up(n, m):
    return ((n + m - 1) // m) * m


def _pad2(a, rows, cols):
    out = jnp.zeros((rows, cols), a.dtype)
    return out.at[: a.shape[0], : a.shape[1]].set(a)


def _gelu_f32(h):
    # exact (erf-based) GELU, matching torch.nn.functional.gelu default
    return 0.5 * h * (1.0 + jax.lax.erf(h * 0.7071067811865476))


def _bdot(a, w_ref):
    # bf16 MXU operands, f32 accumulation (no-op cast if already bf16)
    return jnp.dot(a.astype(jnp.bfloat16), w_ref[...],
                   preferred_element_type=jnp.float32)


# ----------------------------- Pallas kernels -------------------------------

def _feat_atten_kernel(xe_ref, wm_ref, bm_ref, wa_ref, x_ref, att_ref):
    # mlp_feature folded to one affine: x = gelu(xe @ Wm + bm)
    h = _bdot(xe_ref[...], wm_ref) + bm_ref[...]
    x = _gelu_f32(h)
    x_ref[...] = x.astype(x_ref.dtype)                      # bf16 activation out
    # fused bond/cycle attention matvecs (cols 0/1 of wa) + leaky_relu epilogue
    a = _bdot(x, wa_ref)
    att_ref[...] = jnp.where(a >= 0.0, a, 0.01 * a)         # f32 logits


def _bc_kernel(x_ref, w_ref, b_ref, o_ref):
    # fused bond (step 0) / cycle (step 1) agg MLP: gelu(x @ W + b)
    h = _bdot(x_ref[0], w_ref[0]) + b_ref[0]
    o_ref[0] = _gelu_f32(h).astype(o_ref.dtype)


def _edge_agg_kernel(x_ref, resid_ref, we_ref, wl_ref, b_ref, o_ref):
    # folded edge_lin pair, + residual (pre-summed in JAX), folded lin pair+BN, GELU
    h = _bdot(x_ref[...], we_ref)
    h = h + resid_ref[...].astype(jnp.float32)
    h = _bdot(h, wl_ref) + b_ref[...]
    o_ref[...] = _gelu_f32(h).astype(o_ref.dtype)


def _graph_kernel(g_ref, wg_ref, b_ref, wc_ref, o_ref):
    # folded graph_lin pair + BN -> GELU -> classifier lin
    h = _bdot(g_ref[...], wg_ref) + b_ref[...]
    h = _gelu_f32(h)
    o_ref[...] = _bdot(h, wc_ref)                            # f32 logits


# ------------------------------ call wrappers --------------------------------

def _row_grid(n):
    """Whole-array block when small; for mid-size n guarantee >=2 parallel steps
    (both v7x TensorCores); 1024-row tiles beyond that."""
    if n <= ROW_TILE:
        return n, 1
    if n <= 2 * ROW_TILE:
        tm = _round_up(pl.cdiv(n, 2), 8)
        return tm, pl.cdiv(n, tm)
    return ROW_TILE, pl.cdiv(n, ROW_TILE)


def _row_call(kernel, row_inputs, weight_inputs, outs):
    """Row-tiled launch: row_inputs tiled on a parallel grid axis, weights whole.
    outs: list of (cols, dtype)."""
    n = row_inputs[0].shape[0]
    tm, steps = _row_grid(n)
    row = lambda i: (i, 0)
    full = lambda i: (0, 0)
    in_specs = ([pl.BlockSpec((tm, a.shape[1]), row) for a in row_inputs]
                + [pl.BlockSpec(w.shape, full) for w in weight_inputs])
    shapes = [jax.ShapeDtypeStruct((n, c), dt) for c, dt in outs]
    specs = [pl.BlockSpec((tm, c), row) for c, _ in outs]
    multi = len(outs) > 1
    return pl.pallas_call(
        kernel,
        out_shape=tuple(shapes) if multi else shapes[0],
        grid=(steps,),
        in_specs=in_specs,
        out_specs=tuple(specs) if multi else specs[0],
        compiler_params=pltpu.CompilerParams(
            dimension_semantics=("parallel",),
            vmem_limit_bytes=VMEM_LIMIT),
    )(*row_inputs, *weight_inputs)


def _bc_call(bc_in, bc_w, bc_b):
    """Fused bond+cycle aggregation MLP: 2-step grid selects the weight block."""
    _, rows, hp = bc_in.shape
    opc = bc_w.shape[2]
    sel = lambda i: (i, 0, 0)
    return pl.pallas_call(
        _bc_kernel,
        out_shape=jax.ShapeDtypeStruct((2, rows, opc), jnp.bfloat16),
        grid=(2,),
        in_specs=[pl.BlockSpec((1, rows, hp), sel),
                  pl.BlockSpec((1, hp, opc), sel),
                  pl.BlockSpec((1, 1, opc), sel)],
        out_specs=pl.BlockSpec((1, rows, opc), sel),
        compiler_params=pltpu.CompilerParams(
            dimension_semantics=("parallel",),
            vmem_limit_bytes=VMEM_LIMIT),
    )(bc_in, bc_w, bc_b)


# --------------------------- plain-JAX graph glue ----------------------------
# TODO(synk): torch_geometric softmax / torch_scatter are irregular,
# data-dependent gather/scatter ops; they stay in plain JAX (segment_sum /
# segment_max) as glue between the fused kernels.

def seg_softmax(att, idx, num_segments):
    m = jax.ops.segment_max(att, idx, num_segments=num_segments)
    e = jnp.exp(att - m[idx])
    s = jax.ops.segment_sum(e, idx, num_segments=num_segments)
    return e / (s[idx] + 1e-16)


def seg_mean(x, idx, num_segments):
    s = jax.ops.segment_sum(x, idx, num_segments=num_segments)
    cnt = jax.ops.segment_sum(jnp.ones((x.shape[0], 1), x.dtype), idx,
                              num_segments=num_segments)
    return s / jnp.maximum(cnt, 1.0)


# ------------------------------ parameters ----------------------------------

def _bn_init(n):
    # (gamma, beta, running_mean, running_var)
    return (jnp.ones((n,), jnp.float32), jnp.zeros((n,), jnp.float32),
            jnp.zeros((n,), jnp.float32), jnp.ones((n,), jnp.float32))


def init_params(key, in_ch, hidden, out_ch, num_classes, num_emb=8):
    ks = iter(jax.random.split(key, 32))

    def w(fan_in, fan_out):  # stored as (in, out) = torch weight transposed
        bound = math.sqrt(6.0 / fan_in)
        return jax.random.uniform(next(ks), (fan_in, fan_out), jnp.float32,
                                  -bound, bound)

    def b(n, fan_in):
        bound = 1.0 / math.sqrt(fan_in)
        return jax.random.uniform(next(ks), (n,), jnp.float32, -bound, bound)

    p = {}
    p['embedding'] = jax.random.normal(next(ks), (num_emb, in_ch), jnp.float32)
    # mlp_feature: Linear(2in,2in)+b, Linear(2in,hidden)+b, BN(hidden), GELU
    p['mlp_w1'] = w(2 * in_ch, 2 * in_ch)
    p['mlp_b1'] = b(2 * in_ch, 2 * in_ch)
    p['mlp_w2'] = w(2 * in_ch, hidden)
    p['mlp_b2'] = b(hidden, 2 * in_ch)
    p['mlp_bn'] = _bn_init(hidden)
    # bond_agg_layer
    p['bond_atten_w'] = w(hidden, 1)
    p['bond_w1'] = w(hidden, out_ch)
    p['bond_w2'] = w(out_ch, out_ch)
    p['bond_bn'] = _bn_init(out_ch)
    # cycle_agg_layer
    p['cycle_atten_w'] = w(hidden, 1)
    p['cycle_w1'] = w(hidden, out_ch)
    p['cycle_w2'] = w(out_ch, out_ch)
    p['cycle_bn'] = _bn_init(out_ch)
    # edge_agg_layer
    p['edge_lin_w'] = w(hidden, out_ch)
    p['edge_lin2_w'] = w(out_ch, out_ch)
    p['edge_l_w'] = w(out_ch, out_ch)
    p['edge_l2_w'] = w(out_ch, out_ch)
    p['edge_bn'] = _bn_init(out_ch)
    # graph_agg_layer
    p['graph_w1'] = w(out_ch, out_ch)
    p['graph_w2'] = w(out_ch, out_ch)
    p['graph_lin_w'] = w(out_ch, num_classes)
    p['graph_bn'] = _bn_init(out_ch)
    return p


def prepare_params(p, hidden, out_ch, num_classes):
    """Fold every back-to-back Linear->Linear(+BN) pair into a single weight/bias
    (f32 fold, one bf16 cast), zero-pad feature dims to 128 (lane-dense kernel
    outputs; padded columns stay exactly zero all the way through), and cast
    matmul weights to bf16.  Biases/shifts stay f32."""
    hp = _round_up(hidden, LANE)
    op = _round_up(out_ch, LANE)
    cp = _round_up(num_classes, LANE)

    def bn_scale_shift(bn):
        gamma, beta, mean, var = bn
        scale = gamma / jnp.sqrt(var + 1e-5)
        shift = beta - mean * scale
        return scale, shift

    def padw(wmat, rows, cols):
        return _pad2(wmat, rows, cols).astype(jnp.bfloat16)

    def padb(bvec, cols):
        return _pad2(bvec.reshape(1, -1), 1, cols).astype(jnp.float32)

    q = {'embedding': p['embedding']}

    # --- mlp_feature: (Linear+b) -> (Linear+b) -> BN folded into one affine ---
    scale, shift = bn_scale_shift(p['mlp_bn'])
    w2f = p['mlp_w2'] * scale[None, :]                       # BN into W2
    wm = p['mlp_w1'] @ w2f                                   # (2in, hidden)
    bm = p['mlp_b1'] @ w2f + p['mlp_b2'] * scale + shift     # (hidden,)
    two_in = wm.shape[0]
    q['mlp_w'] = padw(wm, two_in, hp)
    q['mlp_b'] = padb(bm, hp)

    # fused attention matvec weights: col 0 = bond_atten, col 1 = cycle_atten
    wa = jnp.zeros((hp, LANE), jnp.float32)
    wa = wa.at[:hidden, 0].set(p['bond_atten_w'][:, 0])
    wa = wa.at[:hidden, 1].set(p['cycle_atten_w'][:, 0])
    q['atten_w'] = wa.astype(jnp.bfloat16)

    # --- bond / cycle agg: lin @ lin2 with BN folded, stacked for fused call ---
    def agg_fold(w1, w2, bn):
        s, sh = bn_scale_shift(bn)
        wf = w1 @ (w2 * s[None, :])                          # (hidden, out)
        return padw(wf, hp, op), padb(sh, op)

    bw, bb = agg_fold(p['bond_w1'], p['bond_w2'], p['bond_bn'])
    cw, cb = agg_fold(p['cycle_w1'], p['cycle_w2'], p['cycle_bn'])
    q['bc_w'] = jnp.stack([bw, cw], axis=0)                  # (2, hp, op) bf16
    q['bc_b'] = jnp.stack([bb, cb], axis=0)                  # (2, 1, op) f32

    # --- edge_agg: edge_lin@edge_lin2 folded, lin@lin2 + BN folded ---
    scale, shift = bn_scale_shift(p['edge_bn'])
    we = p['edge_lin_w'] @ p['edge_lin2_w']                  # (hidden, out)
    wl = p['edge_l_w'] @ (p['edge_l2_w'] * scale[None, :])   # (out, out)
    q['edge_we'] = padw(we, hp, op)
    q['edge_wl'] = padw(wl, op, op)
    q['edge_b'] = padb(shift, op)

    # --- graph_agg: graph_lin@graph_lin2 + BN folded, + classifier lin ---
    scale, shift = bn_scale_shift(p['graph_bn'])
    wg = p['graph_w1'] @ (p['graph_w2'] * scale[None, :])    # (out, out)
    q['graph_w'] = padw(wg, op, op)
    q['graph_b'] = padb(shift, op)
    q['graph_lin_w'] = padw(p['graph_lin_w'], op, cp)
    return q


# ------------------------------ forward pass ---------------------------------

@functools.partial(jax.jit, static_argnames=('num_nodes', 'num_cycles',
                                             'num_graphs', 'num_classes'))
def cybond_forward(q, sub_x, edge_index, batch, cycle_ids, cycle_edge_ids,
                   num_nodes, num_cycles, num_graphs, num_classes):
    # embedding(sub_x.int()).squeeze(1) + edge endpoint concat (plain-JAX gathers)
    x0 = q['embedding'][sub_x[:, 0]]                         # [N, in]
    src, dst = edge_index[0], edge_index[1]
    xe = jnp.concatenate([x0[src], x0[dst]], axis=1)         # [E, 2*in] f32
    num_edges = xe.shape[0]
    hp = q['mlp_w'].shape[1]
    op = q['edge_wl'].shape[1]

    # mlp_feature (folded affine + BN + GELU) + both attention logits, one kernel
    x, att = _row_call(
        _feat_atten_kernel, [xe],
        [q['mlp_w'], q['mlp_b'], q['atten_w']],
        [(hp, jnp.bfloat16), (LANE, jnp.float32)])           # x bf16, att f32
    att_bond = att[:, 0:1]                                   # leaky_relu'd logits
    att_cycle = att[:, 1:2]

    # ---- bond / cycle attention-weighted means (segment glue, f32) ----
    a = seg_softmax(att_bond, dst, num_nodes)
    bond_in = seg_mean(a * x, dst, num_nodes)                # [N, hp] f32
    ac = seg_softmax(att_cycle[cycle_edge_ids], cycle_ids, num_cycles)
    cyc_in = seg_mean(ac * x[cycle_edge_ids], cycle_ids, num_cycles)  # [C, hp]

    # ---- fused bond + cycle aggregation MLP (single pallas_call) ----
    rows = max(num_nodes, num_cycles)
    bc_in = jnp.zeros((2, rows, hp), jnp.bfloat16)
    bc_in = bc_in.at[0, :num_nodes].set(bond_in.astype(jnp.bfloat16))
    bc_in = bc_in.at[1, :num_cycles].set(cyc_in.astype(jnp.bfloat16))
    bc_out = _bc_call(bc_in, q['bc_w'], q['bc_b'])           # (2, rows, op) bf16
    bond = bc_out[0, :num_nodes]
    cycle = bc_out[1, :num_cycles]

    # ---- edge_agg_layer: residual pre-summed in JAX, one fused kernel ----
    x_cycle = jax.ops.segment_sum(cycle[cycle_ids].astype(jnp.float32),
                                  cycle_edge_ids, num_segments=num_edges)
    resid = (bond[src].astype(jnp.float32) + bond[dst].astype(jnp.float32)
             + x_cycle).astype(jnp.bfloat16)                 # [E, op] bf16
    x_edge = _row_call(
        _edge_agg_kernel, [x, resid],
        [q['edge_we'], q['edge_wl'], q['edge_b']],
        [(op, jnp.bfloat16)])                                # [E, op] bf16

    # ---- graph_agg_layer (+ classifier, single fused kernel) ----
    edge_batch = batch[src]
    g = jax.ops.segment_sum(x_edge.astype(jnp.float32), edge_batch,
                            num_segments=num_graphs)         # [G, op] f32
    out = _row_call(
        _graph_kernel, [g],
        [q['graph_w'], q['graph_b'], q['graph_lin_w']],
        [(q['graph_lin_w'].shape[1], jnp.float32)])          # [G, 128] f32
    return out[:, :num_classes]


# ----------------------------------- main ------------------------------------

if __name__ == "__main__":
    in_ch, hidden, out_ch, num_classes = 8, 32, 16, 2        # name == 'MUTAG'
    num_nodes, num_graphs = 10, 2

    key = jax.random.PRNGKey(0)
    kp, kx = jax.random.split(key)
    raw_params = init_params(kp, in_ch, hidden, out_ch, num_classes, num_emb=8)
    params = prepare_params(raw_params, hidden, out_ch, num_classes)

    # node labels (MUTAG: embedding table of size 7+1)
    sub_x = jax.random.randint(kx, (num_nodes, 1), 0, 8, dtype=jnp.int32)

    # two graphs: a 6-cycle (nodes 0..5) and a 4-cycle (nodes 6..9), directed both ways
    edges = [(0, 1), (1, 0), (1, 2), (2, 1), (2, 3), (3, 2),
             (3, 4), (4, 3), (4, 5), (5, 4), (5, 0), (0, 5),
             (6, 7), (7, 6), (7, 8), (8, 7), (8, 9), (9, 8), (9, 6), (6, 9)]
    sub_edge_index = jnp.array(edges, dtype=jnp.int32).T     # [2, 20]
    batch = jnp.array([0] * 6 + [1] * 4, dtype=jnp.int32)    # [10]

    # cycle_info: [2] = cycle id per membership, [3] = edge id per membership
    cycle_ids = jnp.array([0] * 6 + [1] * 4, dtype=jnp.int32)
    cycle_edge_ids = jnp.array([0, 2, 4, 6, 8, 10, 12, 14, 16, 18], dtype=jnp.int32)
    num_cycles = 2

    out = cybond_forward(params, sub_x, sub_edge_index, batch,
                         cycle_ids, cycle_edge_ids,
                         num_nodes, num_cycles, num_graphs, num_classes)
    out = jax.block_until_ready(out)
    assert out.shape == (num_graphs, num_classes)
    assert bool(jnp.all(jnp.isfinite(out)))
    print("KERNEL_OK")
</pallas_src>

<mosaic_0001>
module attributes {stable_mosaic.version = 11 : i64} {
  func.func @_feat_atten_kernel(%arg0: i32, %arg1: memref<20x16xf32, #tpu.memory_space<vmem>>, %arg2: memref<16x128xbf16, #tpu.memory_space<vmem>>, %arg3: memref<1x128xf32, #tpu.memory_space<vmem>>, %arg4: memref<128x128xbf16, #tpu.memory_space<vmem>>, %arg5: memref<20x128xbf16, #tpu.memory_space<vmem>>, %arg6: memref<20x128xf32, #tpu.memory_space<vmem>>) attributes {dimension_semantics = [#tpu.dimension_semantics<parallel>], iteration_bounds = array<i64: 1>, scalar_prefetch = 0 : i64, scratch_operands = 0 : i64, tpu.core_type = #tpu.core_type<tc>, window_params = [{transform_indices = @transform_0, window_bounds = array<i64: 20, 16>}, {pipeline_mode = #tpu.pipeline_mode<synchronous>, transform_indices = @transform_1, window_bounds = array<i64: 16, 128>}, {pipeline_mode = #tpu.pipeline_mode<synchronous>, transform_indices = @transform_2, window_bounds = array<i64: 1, 128>}, {pipeline_mode = #tpu.pipeline_mode<synchronous>, transform_indices = @transform_3, window_bounds = array<i64: 128, 128>}, {transform_indices = @transform_4, window_bounds = array<i64: 20, 128>}, {transform_indices = @transform_5, window_bounds = array<i64: 20, 128>}]} {
    %c0 = arith.constant 0 : index
    %c0_0 = arith.constant 0 : index
    %0 = vector.load %arg1[%c0, %c0_0] : memref<20x16xf32, #tpu.memory_space<vmem>>, vector<20x16xf32>
    %1 = arith.truncf %0 : vector<20x16xf32> to vector<20x16xbf16>
    %c0_1 = arith.constant 0 : index
    %c0_2 = arith.constant 0 : index
    %2 = vector.load %arg2[%c0_1, %c0_2] : memref<16x128xbf16, #tpu.memory_space<vmem>>, vector<16x128xbf16>
    %cst = arith.constant dense<0.000000e+00> : vector<20x128xf32>
    %3 = tpu.matmul %1, %2, %cst {dimension_numbers = #tpu.dot_dimension_numbers<[1], [0], [0], [1], [0, 0, 1, 1], [], []>} : vector<20x16xbf16>, vector<16x128xbf16>, vector<20x128xf32> -> vector<20x128xf32>
    %c0_3 = arith.constant 0 : index
    %c0_4 = arith.constant 0 : index
    %4 = vector.load %arg3[%c0_3, %c0_4] : memref<1x128xf32, #tpu.memory_space<vmem>>, vector<1x128xf32>
    %5 = vector.broadcast %4 : vector<1x128xf32> to vector<20x128xf32>
    %6 = arith.addf %3, %5 : vector<20x128xf32>
    %cst_5 = arith.constant 5.000000e-01 : f32
    %7 = vector.broadcast %cst_5 : f32 to vector<20x128xf32>
    %8 = arith.mulf %7, %6 : vector<20x128xf32>
    %cst_6 = arith.constant 0.707106769 : f32
    %9 = vector.broadcast %cst_6 : f32 to vector<20x128xf32>
    %10 = arith.mulf %6, %9 : vector<20x128xf32>
    %11 = math.erf %10 : vector<20x128xf32>
    %cst_7 = arith.constant 1.000000e+00 : f32
    %12 = vector.broadcast %cst_7 : f32 to vector<20x128xf32>
    %13 = arith.addf %12, %11 : vector<20x128xf32>
    %14 = arith.mulf %8, %13 : vector<20x128xf32>
    %15 = arith.truncf %14 : vector<20x128xf32> to vector<20x128xbf16>
    %c0_8 = arith.constant 0 : index
    %c0_9 = arith.constant 0 : index
    %16 = vector.load %arg5[%c0_8, %c0_9] : memref<20x128xbf16, #tpu.memory_space<vmem>>, vector<20x128xbf16>
    tpu.vector_store %arg5[%c0_8, %c0_9], %15 {strides = array<i32>} : memref<20x128xbf16, #tpu.memory_space<vmem>>, vector<20x128xbf16>,
    %17 = arith.truncf %14 : vector<20x128xf32> to vector<20x128xbf16>
    %c0_10 = arith.constant 0 : index
    %c0_11 = arith.constant 0 : index
    %18 = vector.load %arg4[%c0_10, %c0_11] : memref<128x128xbf16, #tpu.memory_space<vmem>>, vector<128x128xbf16>
    %cst_12 = arith.constant dense<0.000000e+00> : vector<20x128xf32>
    %19 = tpu.matmul %17, %18, %cst_12 {dimension_numbers = #tpu.dot_dimension_numbers<[1], [0], [0], [1], [0, 0, 1, 1], [], []>} : vector<20x128xbf16>, vector<128x128xbf16>, vector<20x128xf32> -> vector<20x128xf32>
    %cst_13 = arith.constant 0.000000e+00 : f32
    %20 = vector.broadcast %cst_13 : f32 to vector<20x128xf32>
    %21 = arith.cmpf oge, %19, %20 : vector<20x128xf32>
    %cst_14 = arith.constant 0.00999999977 : f32
    %22 = vector.broadcast %cst_14 : f32 to vector<20x128xf32>
    %23 = arith.mulf %22, %19 : vector<20x128xf32>
    %24 = arith.select %21, %19, %23 : vector<20x128xi1>, vector<20x128xf32>
    %c0_15 = arith.constant 0 : index
    %c0_16 = arith.constant 0 : index
    %25 = vector.load %arg6[%c0_15, %c0_16] : memref<20x128xf32, #tpu.memory_space<vmem>>, vector<20x128xf32>
    tpu.vector_store %arg6[%c0_15, %c0_16], %24 {strides = array<i32>} : memref<20x128xf32, #tpu.memory_space<vmem>>, vector<20x128xf32>,
    return
  }
  func.func @transform_0(%arg0: i32) -> (i32, i32) {
    %c0_i32 = arith.constant 0 : i32
    %c0_i32_0 = arith.constant 0 : i32
    return %arg0, %c0_i32 : i32, i32
  }
  func.func @transform_1(%arg0: i32) -> (i32, i32) {
    %c0_i32 = arith.constant 0 : i32
    %c0_i32_0 = arith.constant 0 : i32
    %c0_i32_1 = arith.constant 0 : i32
    return %c0_i32, %c0_i32_0 : i32, i32
  }
  func.func @transform_2(%arg0: i32) -> (i32, i32) {
    %c0_i32 = arith.constant 0 : i32
    %c0_i32_0 = arith.constant 0 : i32
    %c0_i32_1 = arith.constant 0 : i32
    return %c0_i32, %c0_i32_0 : i32, i32
  }
  func.func @transform_3(%arg0: i32) -> (i32, i32) {
    %c0_i32 = arith.constant 0 : i32
    %c0_i32_0 = arith.constant 0 : i32
    %c0_i32_1 = arith.constant 0 : i32
    return %c0_i32, %c0_i32_0 : i32, i32
  }
  func.func @transform_4(%arg0: i32) -> (i32, i32) {
    %c0_i32 = arith.constant 0 : i32
    %c0_i32_0 = arith.constant 0 : i32
    return %arg0, %c0_i32 : i32, i32
  }
  func.func @transform_5(%arg0: i32) -> (i32, i32) {
    %c0_i32 = arith.constant 0 : i32
    %c0_i32_0 = arith.constant 0 : i32
    return %arg0, %c0_i32 : i32, i32
  }
}

module attributes {stable_mosaic.version = 11 : i64} {
  func.func @_bc_kernel(%arg0: i32, %arg1: memref<1x10x128xbf16, #tpu.memory_space<vmem>>, %arg2: memref<1x128x128xbf16, #tpu.memory_space<vmem>>, %arg3: memref<1x1x128xf32, #tpu.memory_space<vmem>>, %arg4: memref<1x10x128xbf16, #tpu.memory_space<vmem>>) attributes {dimension_semantics = [#tpu.dimension_semantics<parallel>], iteration_bounds = array<i64: 2>, scalar_prefetch = 0 : i64, scratch_operands = 0 : i64, tpu.core_type = #tpu.core_type<tc>, window_params = [{transform_indices = @transform_0, window_bounds = array<i64: 1, 10, 128>}, {transform_indices = @transform_1, window_bounds = array<i64: 1, 128, 128>}, {transform_indices = @transform_2, window_bounds = array<i64: 1, 1, 128>}, {transform_indices = @transform_3, window_bounds = array<i64: 1, 10, 128>}]} {
    %c0 = arith.constant 0 : index
    %c0_0 = arith.constant 0 : index
    %c0_1 = arith.constant 0 : index
    %0 = vector.load %arg1[%c0, %c0_0, %c0_1] : memref<1x10x128xbf16, #tpu.memory_space<vmem>>, vector<1x10x128xbf16>
    %1 = vector.shape_cast %0 : vector<1x10x128xbf16> to vector<10x128xbf16>
    %c0_2 = arith.constant 0 : index
    %c0_3 = arith.constant 0 : index
    %c0_4 = arith.constant 0 : index
    %2 = vector.load %arg2[%c0_2, %c0_3, %c0_4] : memref<1x128x128xbf16, #tpu.memory_space<vmem>>, vector<1x128x128xbf16>
    %3 = vector.shape_cast %2 : vector<1x128x128xbf16> to vector<128x128xbf16>
    %cst = arith.constant dense<0.000000e+00> : vector<10x128xf32>
    %4 = tpu.matmul %1, %3, %cst {dimension_numbers = #tpu.dot_dimension_numbers<[1], [0], [0], [1], [0, 0, 1, 1], [], []>} : vector<10x128xbf16>, vector<128x128xbf16>, vector<10x128xf32> -> vector<10x128xf32>
    %c0_5 = arith.constant 0 : index
    %c0_6 = arith.constant 0 : index
    %c0_7 = arith.constant 0 : index
    %5 = vector.load %arg3[%c0_5, %c0_6, %c0_7] : memref<1x1x128xf32, #tpu.memory_space<vmem>>, vector<1x1x128xf32>
    %6 = vector.shape_cast %5 : vector<1x1x128xf32> to vector<1x128xf32>
    %7 = vector.broadcast %6 : vector<1x128xf32> to vector<10x128xf32>
    %8 = arith.addf %4, %7 : vector<10x128xf32>
    %cst_8 = arith.constant 5.000000e-01 : f32
    %9 = vector.broadcast %cst_8 : f32 to vector<10x128xf32>
    %10 = arith.mulf %9, %8 : vector<10x128xf32>
    %cst_9 = arith.constant 0.707106769 : f32
    %11 = vector.broadcast %cst_9 : f32 to vector<10x128xf32>
    %12 = arith.mulf %8, %11 : vector<10x128xf32>
    %13 = math.erf %12 : vector<10x128xf32>
    %cst_10 = arith.constant 1.000000e+00 : f32
    %14 = vector.broadcast %cst_10 : f32 to vector<10x128xf32>
    %15 = arith.addf %14, %13 : vector<10x128xf32>
    %16 = arith.mulf %10, %15 : vector<10x128xf32>
    %17 = arith.truncf %16 : vector<10x128xf32> to vector<10x128xbf16>
    %c0_11 = arith.constant 0 : index
    %c0_12 = arith.constant 0 : index
    %c0_13 = arith.constant 0 : index
    %18 = vector.load %arg4[%c0_11, %c0_12, %c0_13] : memref<1x10x128xbf16, #tpu.memory_space<vmem>>, vector<1x10x128xbf16>
    %19 = vector.shape_cast %18 : vector<1x10x128xbf16> to vector<10x128xbf16>
    %20 = vector.shape_cast %17 : vector<10x128xbf16> to vector<1x10x128xbf16>
    tpu.vector_store %arg4[%c0_11, %c0_12, %c0_13], %20 {strides = array<i32>} : memref<1x10x128xbf16, #tpu.memory_space<vmem>>, vector<1x10x128xbf16>,
    return
  }
  func.func @transform_0(%arg0: i32) -> (i32, i32, i32) {
    %c0_i32 = arith.constant 0 : i32
    %c0_i32_0 = arith.constant 0 : i32
    %c0_i32_1 = arith.constant 0 : i32
    return %arg0, %c0_i32, %c0_i32_0 : i32, i32, i32
  }
  func.func @transform_1(%arg0: i32) -> (i32, i32, i32) {
    %c0_i32 = arith.constant 0 : i32
    %c0_i32_0 = arith.constant 0 : i32
    %c0_i32_1 = arith.constant 0 : i32
    return %arg0, %c0_i32, %c0_i32_0 : i32, i32, i32
  }
  func.func @transform_2(%arg0: i32) -> (i32, i32, i32) {
    %c0_i32 = arith.constant 0 : i32
    %c0_i32_0 = arith.constant 0 : i32
    %c0_i32_1 = arith.constant 0 : i32
    return %arg0, %c0_i32, %c0_i32_0 : i32, i32, i32
  }
  func.func @transform_3(%arg0: i32) -> (i32, i32, i32) {
    %c0_i32 = arith.constant 0 : i32
    %c0_i32_0 = arith.constant 0 : i32
    %c0_i32_1 = arith.constant 0 : i32
    return %arg0, %c0_i32, %c0_i32_0 : i32, i32, i32
  }
}

module attributes {stable_mosaic.version = 11 : i64} {
  func.func @_edge_agg_kernel(%arg0: i32, %arg1: memref<20x128xbf16, #tpu.memory_space<vmem>>, %arg2: memref<20x128xbf16, #tpu.memory_space<vmem>>, %arg3: memref<128x128xbf16, #tpu.memory_space<vmem>>, %arg4: memref<128x128xbf16, #tpu.memory_space<vmem>>, %arg5: memref<1x128xf32, #tpu.memory_space<vmem>>, %arg6: memref<20x128xbf16, #tpu.memory_space<vmem>>) attributes {dimension_semantics = [#tpu.dimension_semantics<parallel>], iteration_bounds = array<i64: 1>, scalar_prefetch = 0 : i64, scratch_operands = 0 : i64, tpu.core_type = #tpu.core_type<tc>, window_params = [{transform_indices = @transform_0, window_bounds = array<i64: 20, 128>}, {transform_indices = @transform_1, window_bounds = array<i64: 20, 128>}, {pipeline_mode = #tpu.pipeline_mode<synchronous>, transform_indices = @transform_2, window_bounds = array<i64: 128, 128>}, {pipeline_mode = #tpu.pipeline_mode<synchronous>, transform_indices = @transform_3, window_bounds = array<i64: 128, 128>}, {pipeline_mode = #tpu.pipeline_mode<synchronous>, transform_indices = @transform_4, window_bounds = array<i64: 1, 128>}, {transform_indices = @transform_5, window_bounds = array<i64: 20, 128>}]} {
    %c0 = arith.constant 0 : index
    %c0_0 = arith.constant 0 : index
    %0 = vector.load %arg1[%c0, %c0_0] : memref<20x128xbf16, #tpu.memory_space<vmem>>, vector<20x128xbf16>
    %c0_1 = arith.constant 0 : index
    %c0_2 = arith.constant 0 : index
    %1 = vector.load %arg3[%c0_1, %c0_2] : memref<128x128xbf16, #tpu.memory_space<vmem>>, vector<128x128xbf16>
    %cst = arith.constant dense<0.000000e+00> : vector<20x128xf32>
    %2 = tpu.matmul %0, %1, %cst {dimension_numbers = #tpu.dot_dimension_numbers<[1], [0], [0], [1], [0, 0, 1, 1], [], []>} : vector<20x128xbf16>, vector<128x128xbf16>, vector<20x128xf32> -> vector<20x128xf32>
    %c0_3 = arith.constant 0 : index
    %c0_4 = arith.constant 0 : index
    %3 = vector.load %arg2[%c0_3, %c0_4] : memref<20x128xbf16, #tpu.memory_space<vmem>>, vector<20x128xbf16>
    %4 = arith.extf %3 : vector<20x128xbf16> to vector<20x128xf32>
    %5 = arith.addf %2, %4 : vector<20x128xf32>
    %6 = arith.truncf %5 : vector<20x128xf32> to vector<20x128xbf16>
    %c0_5 = arith.constant 0 : index
    %c0_6 = arith.constant 0 : index
    %7 = vector.load %arg4[%c0_5, %c0_6] : memref<128x128xbf16, #tpu.memory_space<vmem>>, vector<128x128xbf16>
    %cst_7 = arith.constant dense<0.000000e+00> : vector<20x128xf32>
    %8 = tpu.matmul %6, %7, %cst_7 {dimension_numbers = #tpu.dot_dimension_numbers<[1], [0], [0], [1], [0, 0, 1, 1], [], []>} : vector<20x128xbf16>, vector<128x128xbf16>, vector<20x128xf32> -> vector<20x128xf32>
    %c0_8 = arith.constant 0 : index
    %c0_9 = arith.constant 0 : index
    %9 = vector.load %arg5[%c0_8, %c0_9] : memref<1x128xf32, #tpu.memory_space<vmem>>, vector<1x128xf32>
    %10 = vector.broadcast %9 : vector<1x128xf32> to vector<20x128xf32>
    %11 = arith.addf %8, %10 : vector<20x128xf32>
    %cst_10 = arith.constant 5.000000e-01 : f32
    %12 = vector.broadcast %cst_10 : f32 to vector<20x128xf32>
    %13 = arith.mulf %12, %11 : vector<20x128xf32>
    %cst_11 = arith.constant 0.707106769 : f32
    %14 = vector.broadcast %cst_11 : f32 to vector<20x128xf32>
    %15 = arith.mulf %11, %14 : vector<20x128xf32>
    %16 = math.erf %15 : vector<20x128xf32>
    %cst_12 = arith.constant 1.000000e+00 : f32
    %17 = vector.broadcast %cst_12 : f32 to vector<20x128xf32>
    %18 = arith.addf %17, %16 : vector<20x128xf32>
    %19 = arith.mulf %13, %18 : vector<20x128xf32>
    %20 = arith.truncf %19 : vector<20x128xf32> to vector<20x128xbf16>
    %c0_13 = arith.constant 0 : index
    %c0_14 = arith.constant 0 : index
    %21 = vector.load %arg6[%c0_13, %c0_14] : memref<20x128xbf16, #tpu.memory_space<vmem>>, vector<20x128xbf16>
    tpu.vector_store %arg6[%c0_13, %c0_14], %20 {strides = array<i32>} : memref<20x128xbf16, #tpu.memory_space<vmem>>, vector<20x128xbf16>,
    return
  }
  func.func @transform_0(%arg0: i32) -> (i32, i32) {
    %c0_i32 = arith.constant 0 : i32
    %c0_i32_0 = arith.constant 0 : i32
    return %arg0, %c0_i32 : i32, i32
  }
  func.func @transform_1(%arg0: i32) -> (i32, i32) {
    %c0_i32 = arith.constant 0 : i32
    %c0_i32_0 = arith.constant 0 : i32
    return %arg0, %c0_i32 : i32, i32
  }
  func.func @transform_2(%arg0: i32) -> (i32, i32) {
    %c0_i32 = arith.constant 0 : i32
    %c0_i32_0 = arith.constant 0 : i32
    %c0_i32_1 = arith.constant 0 : i32
    return %c0_i32, %c0_i32_0 : i32, i32
  }
  func.func @transform_3(%arg0: i32) -> (i32, i32) {
    %c0_i32 = arith.constant 0 : i32
    %c0_i32_0 = arith.constant 0 : i32
    %c0_i32_1 = arith.constant 0 : i32
    return %c0_i32, %c0_i32_0 : i32, i32
  }
  func.func @transform_4(%arg0: i32) -> (i32, i32) {
    %c0_i32 = arith.constant 0 : i32
    %c0_i32_0 = arith.constant 0 : i32
    %c0_i32_1 = arith.constant 0 : i32
    return %c0_i32, %c0_i32_0 : i32, i32
  }
  func.func @transform_5(%arg0: i32) -> (i32, i32) {
    %c0_i32 = arith.constant 0 : i32
    %c0_i32_0 = arith.constant 0 : i32
    return %arg0, %c0_i32 : i32, i32
  }
}

module attributes {stable_mosaic.version = 11 : i64} {
  func.func @_graph_kernel(%arg0: i32, %arg1: memref<2x128xf32, #tpu.memory_space<vmem>>, %arg2: memref<128x128xbf16, #tpu.memory_space<vmem>>, %arg3: memref<1x128xf32, #tpu.memory_space<vmem>>, %arg4: memref<128x128xbf16, #tpu.memory_space<vmem>>, %arg5: memref<2x128xf32, #tpu.memory_space<vmem>>) attributes {dimension_semantics = [#tpu.dimension_semantics<parallel>], iteration_bounds = array<i64: 1>, scalar_prefetch = 0 : i64, scratch_operands = 0 : i64, tpu.core_type = #tpu.core_type<tc>, window_params = [{transform_indices = @transform_0, window_bounds = array<i64: 2, 128>}, {pipeline_mode = #tpu.pipeline_mode<synchronous>, transform_indices = @transform_1, window_bounds = array<i64: 128, 128>}, {pipeline_mode = #tpu.pipeline_mode<synchronous>, transform_indices = @transform_2, window_bounds = array<i64: 1, 128>}, {pipeline_mode = #tpu.pipeline_mode<synchronous>, transform_indices = @transform_3, window_bounds = array<i64: 128, 128>}, {transform_indices = @transform_4, window_bounds = array<i64: 2, 128>}]} {
    %c0 = arith.constant 0 : index
    %c0_0 = arith.constant 0 : index
    %0 = vector.load %arg1[%c0, %c0_0] : memref<2x128xf32, #tpu.memory_space<vmem>>, vector<2x128xf32>
    %1 = arith.truncf %0 : vector<2x128xf32> to vector<2x128xbf16>
    %c0_1 = arith.constant 0 : index
    %c0_2 = arith.constant 0 : index
    %2 = vector.load %arg2[%c0_1, %c0_2] : memref<128x128xbf16, #tpu.memory_space<vmem>>, vector<128x128xbf16>
    %cst = arith.constant dense<0.000000e+00> : vector<2x128xf32>
    %3 = tpu.matmul %1, %2, %cst {dimension_numbers = #tpu.dot_dimension_numbers<[1], [0], [0], [1], [0, 0, 1, 1], [], []>} : vector<2x128xbf16>, vector<128x128xbf16>, vector<2x128xf32> -> vector<2x128xf32>
    %c0_3 = arith.constant 0 : index
    %c0_4 = arith.constant 0 : index
    %4 = vector.load %arg3[%c0_3, %c0_4] : memref<1x128xf32, #tpu.memory_space<vmem>>, vector<1x128xf32>
    %5 = vector.broadcast %4 : vector<1x128xf32> to vector<2x128xf32>
    %6 = arith.addf %3, %5 : vector<2x128xf32>
    %cst_5 = arith.constant 5.000000e-01 : f32
    %7 = vector.broadcast %cst_5 : f32 to vector<2x128xf32>
    %8 = arith.mulf %7, %6 : vector<2x128xf32>
    %cst_6 = arith.constant 0.707106769 : f32
    %9 = vector.broadcast %cst_6 : f32 to vector<2x128xf32>
    %10 = arith.mulf %6, %9 : vector<2x128xf32>
    %11 = math.erf %10 : vector<2x128xf32>
    %cst_7 = arith.constant 1.000000e+00 : f32
    %12 = vector.broadcast %cst_7 : f32 to vector<2x128xf32>
    %13 = arith.addf %12, %11 : vector<2x128xf32>
    %14 = arith.mulf %8, %13 : vector<2x128xf32>
    %15 = arith.truncf %14 : vector<2x128xf32> to vector<2x128xbf16>
    %c0_8 = arith.constant 0 : index
    %c0_9 = arith.constant 0 : index
    %16 = vector.load %arg4[%c0_8, %c0_9] : memref<128x128xbf16, #tpu.memory_space<vmem>>, vector<128x128xbf16>
    %cst_10 = arith.constant dense<0.000000e+00> : vector<2x128xf32>
    %17 = tpu.matmul %15, %16, %cst_10 {dimension_numbers = #tpu.dot_dimension_numbers<[1], [0], [0], [1], [0, 0, 1, 1], [], []>} : vector<2x128xbf16>, vector<128x128xbf16>, vector<2x128xf32> -> vector<2x128xf32>
    %c0_11 = arith.constant 0 : index
    %c0_12 = arith.constant 0 : index
    %18 = vector.load %arg5[%c0_11, %c0_12] : memref<2x128xf32, #tpu.memory_space<vmem>>, vector<2x128xf32>
    tpu.vector_store %arg5[%c0_11, %c0_12], %17 {strides = array<i32>} : memref<2x128xf32, #tpu.memory_space<vmem>>, vector<2x128xf32>,
    return
  }
  func.func @transform_0(%arg0: i32) -> (i32, i32) {
    %c0_i32 = arith.constant 0 : i32
    %c0_i32_0 = arith.constant 0 : i32
    return %arg0, %c0_i32 : i32, i32
  }
  func.func @transform_1(%arg0: i32) -> (i32, i32) {
    %c0_i32 = arith.constant 0 : i32
    %c0_i32_0 = arith.constant 0 : i32
    %c0_i32_1 = arith.constant 0 : i32
    return %c0_i32, %c0_i32_0 : i32, i32
  }
  func.func @transform_2(%arg0: i32) -> (i32, i32) {
    %c0_i32 = arith.constant 0 : i32
    %c0_i32_0 = arith.constant 0 : i32
    %c0_i32_1 = arith.constant 0 : i32
    return %c0_i32, %c0_i32_0 : i32, i32
  }
  func.func @transform_3(%arg0: i32) -> (i32, i32) {
    %c0_i32 = arith.constant 0 : i32
    %c0_i32_0 = arith.constant 0 : i32
    %c0_i32_1 = arith.constant 0 : i32
    return %c0_i32, %c0_i32_0 : i32, i32
  }
  func.func @transform_4(%arg0: i32) -> (i32, i32) {
    %c0_i32 = arith.constant 0 : i32
    %c0_i32_0 = arith.constant 0 : i32
    return %arg0, %c0_i32 : i32, i32
  }
}

</mosaic_0001>

<bundles_post_ra>
// kernel: cybond_forward.4
= control target key start
LH: loop header
LB: loop body
LE: loop exit
PB: predicated region body
PF: predicated region fallthrough
CT: control target
= control target key end

     0   :  { %vm40_vm0 = vcmask 130048   ;;  %s419_s1 = inlined_call_operand.vmem [shape: bf16[16,128], index: 1, kind: input, shape index: {}]   ;;  %s420_s0 = inlined_call_operand.vmem [shape: f32[20,16], index: 0, kind: input, shape index: {}]   ;;  %s421_s3 = inlined_call_operand.vmem [shape: bf16[128,128], index: 3, kind: input, shape index: {}]   ;;  %s422_s2 = inlined_call_operand.vmem [shape: f32[1,128], index: 2, kind: input, shape index: {}]   ;;  %s423_s4 = inlined_call_operand.vmem [shape: bf16[20,128], index: 4, kind: output, shape index: {0}]   ;;  %s424_s5 = inlined_call_operand.vmem [shape: f32[20,128], index: 5, kind: output, shape index: {1}]  }
   0x1   :  { %v320_v0 = vld [vmem:[%s419_s1] sm:$0xff]   ;;  %v21_v2 = vld [vmem:[%s420_s0 + $0x8] sm:$0xff]  ;;  %v22_v3 = vld [vmem:[%s420_s0 + $0x10] sm:$0xf] }
   0x2   :  { %v20_v1 = vld [vmem:[%s420_s0] sm:$0xff]  ;;  %294 = vmatprep.subr.bf16.mxu0 %v320_v0  ;;  %v24_v5 = vpack.c.bf16 %v22_v3, %v22_v3  ;;  %v321_v6 = vld [vmem:[%s421_s3 + $0x38] sm:$0xff]   ;;  %v322_v7 = vld [vmem:[%s421_s3 + $0x30] sm:$0xff]  }
   0x3   :  { %v23_v4 = vpack.c.bf16 %v21_v2, %v20_v1  ;;  %295 = vmatpush3.bf16.msra.mxu0 %v320_v0  ;;  %300 = vmatprep.subr.bf16.mxu1 %v321_v6  ;;  %v323_v8 = vld [vmem:[%s421_s3 + $0x28] sm:$0xff]   ;;  %v324_v9 = vld [vmem:[%s421_s3 + $0x20] sm:$0xff]   ;;  %v325_v10 = vld [vmem:[%s421_s3 + $0x18] sm:$0xff]  }
   0x4   :  { %301 = vmatpush3.bf16.msra.mxu1 %v321_v6  ;;  %v326_v11 = vld [vmem:[%s421_s3 + $0x10] sm:$0xff]   ;;  %v327_v12 = vld [vmem:[%s421_s3 + $0x8] sm:$0xff]   ;;  %v328_v13 = vld [vmem:[%s421_s3] sm:$0xff]  }
   0x5   :  { %296 = vmatprep.mubr.msk.bf16.mxu0 %vm40_vm0, %v23_v4  ;;  %302 = vmatprep.subr.bf16.mxu1 %v322_v7  ;;  %v258_v14 = vld [vmem:[%s422_s2] ss:$0 sm:$0xff] }
   0x6   :  { %297 = vmatmul.mubr.msk.bf16.vlgmr.msra.gmra.mxu0 %vm40_vm0, %v24_v5 }
   0x8   :  { %303 = vmatpush3.bf16.msra.mxu1 %v322_v7 }
   0x9   :  { %304 = vmatprep.subr.bf16.mxu1 %v323_v8 }
   0xc   :  { %305 = vmatpush3.bf16.msra.mxu1 %v323_v8 }
   0xd   :  { %306 = vmatprep.subr.bf16.mxu1 %v324_v9 }
  0x10   :  { %307 = vmatpush3.bf16.msra.mxu1 %v324_v9 }
  0x11   :  { %308 = vmatprep.subr.bf16.mxu1 %v325_v10 }
  0x14   :  { %309 = vmatpush3.bf16.msra.mxu1 %v325_v10 }
  0x15   :  { %310 = vmatprep.subr.bf16.mxu1 %v326_v11 }
  0x18   :  { %311 = vmatpush3.bf16.msra.mxu1 %v326_v11 }
  0x19   :  { %312 = vmatprep.subr.bf16.mxu1 %v327_v12 }
  0x1c   :  { %313 = vmatpush3.bf16.msra.mxu1 %v327_v12 }
  0x1d   :  { %314 = vmatprep.subr.bf16.mxu1 %v328_v13 }
  0x20   :  { %315 = vmatpush3.bf16.msra.mxu1 %v328_v13 }
  0xc6   :  { %v298_v15 = vpop.f32.mrf.mxu0 }
  0xc7   :  { %v90_v16 = vadd.f32 %v298_v15, %v258_v14 }
  0xc8   :  { %v81_v17 = vpop.f32.mrf.mxu0 }
  0xc9   :  { %v100_v18 = vmul.f32 0.70710677, %v90_v16  ;;  %v82_v19 = vadd.f32 %v258_v14, %v81_v17  ;;  %v97_v26 = vmul.f32 0.5, %v90_v16 }
  0xca   :  { %v299_v20 = vpop.f32.mrf.mxu0 }
  0xcb   :  { %329 = verf.f32 %v100_v18  ;;  %v98_v21 = vmul.f32 0.70710677, %v82_v19  ;;  %v95_v33 = vmul.f32 0.5, %v82_v19 }
  0xcc   :  { %v84_v22 = vpop.f32.mrf.mxu0 }
  0xcd   :  { %331 = verf.f32 %v98_v21  ;;  %v85_v23 = vadd.f32 %v258_v14, %v84_v22 }
  0xcf   :  { %v99_v24 = vmul.f32 0.70710677, %v85_v23  ;;  %v96_v34 = vmul.f32 0.5, %v85_v23 }
  0xd1   :  { %333 = verf.f32 %v99_v24 }
  0xd8   :  { %v330_v25 = vpop.eup %329 }
  0xd9   :  { %v106_v27 = vadd.f32 1.0, %v330_v25 }
  0xda   :  { %v332_v28 = vpop.eup %331 }
  0xdb   :  { %v109_v29 = vmul.f32 %v106_v27, %v97_v26  ;;  %v104_v30 = vadd.f32 1.0, %v332_v28 }
  0xdd   :  { %v111_v31 = vpack.c.bf16 %v109_v29, %v109_v29  ;;  %v107_v36 = vmul.f32 %v104_v30, %v95_v33 }
  0xde   :  { %v334_v32 = vpop.eup %333 }
  0xdf   :  { %v105_v35 = vadd.f32 1.0, %v334_v32  ;;  %125 = vst [vmem:[%s423_s4 + $0x8] sm:$0x3] %v111_v31 }
  0xe1   :  { %v108_v37 = vmul.f32 %v105_v35, %v96_v34 }
  0xe3   :  { %v110_v38 = vpack.c.bf16 %v108_v37, %v107_v36 }
  0xe5   :  { %280 = vst [vmem:[%s423_s4] sm:$0xff] %v110_v38   ;;  %316 = vmatprep.mubr.bf16.mxu1 %v110_v38 }
  0xe6   :  { %317 = vmatmul.mubr.bf16.vlgmr.msra.gmra.mxu1 %v111_v31 }
 0x1a6   :  { %v318_v39 = vpop.f32.mrf.mxu1 }
 0x1a7   :  { %vm240_vm1 = vcmp.ge.f32.partialorder %v318_v39, 0.0  ;;  %v243_v40 = vmul.f32 0.01, %v318_v39 }
 0x1a8   :  { %v224_v41 = vpop.f32.mrf.mxu1 }
 0x1a9   :  { %v246_v42 = vsel %vm240_vm1, %v318_v39, %v243_v40  ;;  %vm238_vm2 = vcmp.ge.f32.partialorder %v224_v41, 0.0  ;;  %v241_v43 = vmul.f32 0.01, %v224_v41 }
 0x1aa   :  { %249 = vst [vmem:[%s424_s5 + $0x10] sm:$0xf] %v246_v42  ;;  %v319_v44 = vpop.f32.mrf.mxu1 }
 0x1ab   :  { %v244_v45 = vsel %vm238_vm2, %v224_v41, %v241_v43 }
 0x1ac   :  { %247 = vst [vmem:[%s424_s5] sm:$0xff] %v244_v45  ;;  %v227_v46 = vpop.f32.mrf.mxu1 }
 0x1ad   :  { %vm239_vm3 = vcmp.ge.f32.partialorder %v227_v46, 0.0  ;;  %v242_v47 = vmul.f32 0.01, %v227_v46 }
 0x1af   :  { %v245_v48 = vsel %vm239_vm3, %v227_v46, %v242_v47 }
 0x1b0   :  { %248 = vst [vmem:[%s424_s5 + $0x8] sm:$0xff] %v245_v48 }

// kernel: cybond_forward.5
= control target key start
LH: loop header
LB: loop body
LE: loop exit
PB: predicated region body
PF: predicated region fallthrough
CT: control target
= control target key end

     0   :  { %s534_s12 = smov 0   ;;  %s566_s0 = inlined_call_operand.vmem [shape: bf16[2,10,128], index: 0, kind: input, shape index: {}]   ;;  %s567_s1 = inlined_call_operand.vmem [shape: bf16[2,128,128], index: 1, kind: input, shape index: {}]   ;;  %s568_s2 = inlined_call_operand.vmem [shape: f32[2,1,128], index: 2, kind: input, shape index: {}]   ;;  %s569_s3 = inlined_call_operand.vmem [shape: bf16[2,10,128], index: 3, kind: output, shape index: {}]  }
   0x1 LB: > { %s422_s13 = sadd.s32 4294967295, %s510_s12   ;;  %p426_p0 = scmp.ge.s32.totalorder %s510_s12, 1  ;;  %s510_s12 = sphi %s534_s12, %s13_s12  }
   0x2   : > { %p155_p1 = scmp.lt.s32.totalorder %s510_s12, 3 }
   0x4   : > { %p156_p2 = pnand %p426_p0, %p155_p1 }
   0x5   : > { %p187_p3 = scmp.lt.s32.totalorder (!%p156_p2), %s422_s13, 1 }
   0x6   : > { %159 = sbr.rel (%p156_p2) target bundleno = 268 (0x10c), region = 32 }
   0xb   : > { %v512_v0 = vmov 0.0   ;;  %vm513_vm0 = vmmov 0   ;;  %s571_s13 = smov (!%p187_p3, %s422_s13), 1 }
   0xc   : > { %461 = vmatprep.subr.bf16.mxu0 %v512_v0  ;;  %477 = vmatprep.mubr.msk.bf16.mxu0 %vm513_vm0, %v512_v0  ;;  %s448_s14 = sshll.u32 %s571_s13, 6  ;;  %s447_s18 = sshll.u32 %s571_s13, 3 }
   0xd   : > { %s196_s17 = scalar_lea.vmem %s567_s1, %s448_s14  ;;  %s191_s21 = scalar_lea.vmem %s566_s0, %s447_s18 }
   0xe   : > { %v491_v1 = vld [vmem:[%s196_s17 + $0x38] sm:$0xff]   ;;  %v492_v2 = vld [vmem:[%s196_s17 + $0x30] sm:$0xff]   ;;  %v493_v3 = vld [vmem:[%s196_s17 + $0x28] sm:$0xff]   ;;  %s199_s24 = scalar_lea.vmem %s568_s2, %s571_s13  ;;  %s204_s27 = scalar_lea.vmem %s569_s3, %s447_s18 }
   0xf   : > { %462 = vmatpush3.bf16.msra.mxu0 %v491_v1  ;;  %v494_v4 = vld [vmem:[%s196_s17 + $0x20] sm:$0xff]   ;;  %v495_v5 = vld [vmem:[%s196_s17 + $0x18] sm:$0xff]   ;;  %v496_v6 = vld [vmem:[%s196_s17 + $0x10] sm:$0xff]  }
  0x10   : > { %463 = vmatprep.subr.bf16.mxu0 %v512_v0  ;;  %v497_v7 = vld [vmem:[%s196_s17 + $0x8] sm:$0xff]   ;;  %v498_v8 = vld [vmem:[%s196_s17] sm:$0xff]  }
  0x11   : > { %v499_v9 = vld [vmem:[%s191_s21] sm:$0x1f]  }
  0x12   : > { %v433_v10 = vld [vmem:[%s199_s24] ss:$0 sm:$0xff] }
  0x13   : > { %464 = vmatpush3.bf16.msra.mxu0 %v492_v2 }
  0x14   : > { %465 = vmatprep.subr.bf16.mxu0 %v512_v0 }
  0x17   : > { %466 = vmatpush3.bf16.msra.mxu0 %v493_v3 }
  0x18   : > { %467 = vmatprep.subr.bf16.mxu0 %v512_v0 }
  0x1b   : > { %468 = vmatpush3.bf16.msra.mxu0 %v494_v4 }
  0x1c   : > { %469 = vmatprep.subr.bf16.mxu0 %v512_v0 }
  0x1f   : > { %470 = vmatpush3.bf16.msra.mxu0 %v495_v5 }
  0x20   : > { %471 = vmatprep.subr.bf16.mxu0 %v512_v0 }
  0x23   : > { %472 = vmatpush3.bf16.msra.mxu0 %v496_v6 }
  0x24   : > { %473 = vmatprep.subr.bf16.mxu0 %v512_v0 }
  0x27   : > { %474 = vmatpush3.bf16.msra.mxu0 %v497_v7 }
  0x28   : > { %475 = vmatprep.subr.bf16.mxu0 %v512_v0 }
  0x2b   : > { %476 = vmatpush3.bf16.msra.mxu0 %v498_v8 }
  0x2e   : > { %478 = vmatmul.mubr.bf16.vlgmr.msra.gmra.mxu0 %v499_v9 }
  0xee   : > { %v319_v11 = vpop.f32.mrf.mxu0 }
  0xef   : > { %v320_v12 = vadd.f32 %v433_v10, %v319_v11 }
  0xf0   : > { %v479_v13 = vpop.f32.mrf.mxu0 }
  0xf1   : > { %v328_v14 = vmul.f32 0.70710677, %v320_v12  ;;  %v326_v20 = vmul.f32 0.5, %v320_v12 }
  0xf2   : > { %v322_v15 = vpop.f32.mrf.mxu0 }
  0xf3   : > { %500 = verf.f32 %v328_v14  ;;  %v323_v16 = vadd.f32 %v433_v10, %v322_v15 }
  0xf4   : > { %v480_v17 = vpop.f32.mrf.mxu0 }
  0xf5   : > { %v329_v18 = vmul.f32 0.70710677, %v323_v16  ;;  %v327_v25 = vmul.f32 0.5, %v323_v16 }
  0xf7   : > { %502 = verf.f32 %v329_v18 }
 0x100   : > { %v501_v19 = vpop.eup %500 }
 0x101   : > { %v332_v21 = vadd.f32 1.0, %v501_v19 }
 0x103   : > { %v334_v22 = vmul.f32 %v332_v21, %v326_v20 }
 0x104   : > { %v503_v23 = vpop.eup %502 }
 0x105   : > { %v450_v24 = vpack.c.bf16 %v334_v22, %v334_v22  ;;  %v333_v26 = vadd.f32 1.0, %v503_v23 }
 0x107   : > { %344 = vst [vmem:[%s204_s27] sm:$0xf] %v450_v24  ;;  %v335_v27 = vmul.f32 %v333_v26, %v327_v25 }
 0x109   : > { %v451_v28 = vpack.c.bf16 %v335_v27, %v335_v27 }
 0x10b   : > { %345 = vst [vmem:[%s204_s27 + $0x4] sm:$0x1] %v451_v28 }
 0x10c PF: > { %s13_s12 = sadd.s32 1, %s510_s12  }
 0x10d   : > { %p10_p4 = scmp.ge.s32.totalorder %s13_s12, 4  }
 0x10f   :  { %12 = sbr.rel (!%p10_p4) target bundleno = 1 (0x1), region = 68 }

// kernel: cybond_forward.6
= control target key start
LH: loop header
LB: loop body
LE: loop exit
PB: predicated region body
PF: predicated region fallthrough
CT: control target
= control target key end

     0   :  { %s525_s2 = inlined_call_operand.vmem [shape: bf16[128,128], index: 2, kind: input, shape index: {}]   ;;  %s526_s0 = inlined_call_operand.vmem [shape: bf16[20,128], index: 0, kind: input, shape index: {}]   ;;  %s527_s3 = inlined_call_operand.vmem [shape: bf16[128,128], index: 3, kind: input, shape index: {}]   ;;  %s528_s1 = inlined_call_operand.vmem [shape: bf16[20,128], index: 1, kind: input, shape index: {}]   ;;  %s529_s4 = inlined_call_operand.vmem [shape: f32[1,128], index: 4, kind: input, shape index: {}]   ;;  %s530_s5 = inlined_call_operand.vmem [shape: bf16[20,128], index: 5, kind: output, shape index: {}]  }
   0x1   :  { %v402_v0 = vld [vmem:[%s525_s2 + $0x38] sm:$0xff]   ;;  %v403_v1 = vld [vmem:[%s525_s2 + $0x30] sm:$0xff]   ;;  %v404_v2 = vld [vmem:[%s525_s2 + $0x28] sm:$0xff]  }
   0x2   :  { %362 = vmatprep.subr.bf16.mxu0 %v402_v0  ;;  %v405_v3 = vld [vmem:[%s525_s2 + $0x20] sm:$0xff]   ;;  %v412_v5 = vld [vmem:[%s527_s3 + $0x38] sm:$0xff]   ;;  %v413_v6 = vld [vmem:[%s527_s3 + $0x30] sm:$0xff]  }
   0x3   :  { %363 = vmatpush3.bf16.msra.mxu0 %v402_v0  ;;  %v410_v4 = vld [vmem:[%s526_s0] sm:$0xff]   ;;  %382 = vmatprep.subr.bf16.mxu1 %v412_v5  ;;  %v406_v7 = vld [vmem:[%s525_s2 + $0x18] sm:$0xff]   ;;  %v414_v8 = vld [vmem:[%s527_s3 + $0x28] sm:$0xff]  }
   0x4   :  { %364 = vmatprep.subr.bf16.mxu0 %v403_v1  ;;  %378 = vmatprep.mubr.bf16.mxu0 %v410_v4  ;;  %v407_v9 = vld [vmem:[%s525_s2 + $0x10] sm:$0xff]   ;;  %v415_v10 = vld [vmem:[%s527_s3 + $0x20] sm:$0xff]   ;;  %v408_v11 = vld [vmem:[%s525_s2 + $0x8] sm:$0xff]  }
   0x5   :  { %383 = vmatpush3.bf16.msra.mxu1 %v412_v5  ;;  %v416_v12 = vld [vmem:[%s527_s3 + $0x18] sm:$0xff]   ;;  %v409_v13 = vld [vmem:[%s525_s2] sm:$0xff]   ;;  %v411_v14 = vld [vmem:[%s526_s0 + $0x8] ss:$0 sps:$4 sm:$0x33]  }
   0x6   :  { %384 = vmatprep.subr.bf16.mxu1 %v413_v6  ;;  %v417_v15 = vld [vmem:[%s527_s3 + $0x10] sm:$0xff]   ;;  %v418_v16 = vld [vmem:[%s527_s3 + $0x8] sm:$0xff]   ;;  %v419_v17 = vld [vmem:[%s527_s3] sm:$0xff]  }
   0x7   :  { %365 = vmatpush3.bf16.msra.mxu0 %v403_v1  ;;  %v42_v18 = vld [vmem:[%s528_s1 + $0x8] sm:$0x3]  ;;  %v334_v20 = vld [vmem:[%s528_s1] sm:$0xff]  }
   0x8   :  { %366 = vmatprep.subr.bf16.mxu0 %v404_v2  ;;  %v45_v21 = vunpack.c.l.bf16 %v42_v18  ;;  %v335_v23 = vunpack.c.l.bf16 %v334_v20  ;;  %v336_v24 = vunpack.c.h.bf16 %v334_v20  ;;  %v318_v32 = vld [vmem:[%s529_s4] ss:$0 sm:$0xff] }
   0x9   :  { %385 = vmatpush3.bf16.msra.mxu1 %v413_v6 }
   0xa   :  { %386 = vmatprep.subr.bf16.mxu1 %v414_v8 }
   0xb   :  { %367 = vmatpush3.bf16.msra.mxu0 %v404_v2 }
   0xc   :  { %368 = vmatprep.subr.bf16.mxu0 %v405_v3 }
   0xd   :  { %387 = vmatpush3.bf16.msra.mxu1 %v414_v8 }
   0xe   :  { %388 = vmatprep.subr.bf16.mxu1 %v415_v10 }
   0xf   :  { %369 = vmatpush3.bf16.msra.mxu0 %v405_v3 }
  0x10   :  { %370 = vmatprep.subr.bf16.mxu0 %v406_v7 }
  0x11   :  { %389 = vmatpush3.bf16.msra.mxu1 %v415_v10 }
  0x12   :  { %390 = vmatprep.subr.bf16.mxu1 %v416_v12 }
  0x13   :  { %371 = vmatpush3.bf16.msra.mxu0 %v406_v7 }
  0x14   :  { %372 = vmatprep.subr.bf16.mxu0 %v407_v9 }
  0x15   :  { %391 = vmatpush3.bf16.msra.mxu1 %v416_v12 }
  0x16   :  { %392 = vmatprep.subr.bf16.mxu1 %v417_v15 }
  0x17   :  { %373 = vmatpush3.bf16.msra.mxu0 %v407_v9 }
  0x18   :  { %374 = vmatprep.subr.bf16.mxu0 %v408_v11 }
  0x19   :  { %393 = vmatpush3.bf16.msra.mxu1 %v417_v15 }
  0x1a   :  { %394 = vmatprep.subr.bf16.mxu1 %v418_v16 }
  0x1b   :  { %375 = vmatpush3.bf16.msra.mxu0 %v408_v11 }
  0x1c   :  { %376 = vmatprep.subr.bf16.mxu0 %v409_v13 }
  0x1d   :  { %395 = vmatpush3.bf16.msra.mxu1 %v418_v16 }
  0x1e   :  { %396 = vmatprep.subr.bf16.mxu1 %v419_v17 }
  0x1f   :  { %377 = vmatpush3.bf16.msra.mxu0 %v409_v13 }
  0x21   :  { %397 = vmatpush3.bf16.msra.mxu1 %v419_v17 }
  0x22   :  { %379 = vmatmul.mubr.bf16.vlgmr.msra.gmra.mxu0 %v411_v14 }
  0xe2   :  { %v380_v19 = vpop.f32.mrf.mxu0 }
  0xe3   :  { %v147_v26 = vadd.f32 %v380_v19, %v45_v21 }
  0xe4   :  { %v138_v22 = vpop.f32.mrf.mxu0 }
  0xe5   :  { %v139_v28 = vadd.f32 %v335_v23, %v138_v22  ;;  %v153_v31 = vpack.c.bf16 %v147_v26, %v147_v26 }
  0xe6   :  { %v381_v25 = vpop.f32.mrf.mxu0 }
  0xe8   :  { %v141_v27 = vpop.f32.mrf.mxu0 }
  0xe9   :  { %v142_v29 = vadd.f32 %v336_v24, %v141_v27 }
  0xeb   :  { %v152_v30 = vpack.c.bf16 %v142_v29, %v139_v28 }
  0xed   :  { %398 = vmatprep.mubr.bf16.mxu1 %v152_v30 }
  0xee   :  { %399 = vmatmul.mubr.bf16.vlgmr.msra.gmra.mxu1 %v153_v31 }
 0x1ae   :  { %v400_v33 = vpop.f32.mrf.mxu1 }
 0x1af   :  { %v268_v34 = vadd.f32 %v400_v33, %v318_v32 }
 0x1b0   :  { %v259_v35 = vpop.f32.mrf.mxu1 }
 0x1b1   :  { %v278_v36 = vmul.f32 0.70710677, %v268_v34  ;;  %v260_v37 = vadd.f32 %v318_v32, %v259_v35  ;;  %v275_v44 = vmul.f32 0.5, %v268_v34 }
 0x1b2   :  { %v401_v38 = vpop.f32.mrf.mxu1 }
 0x1b3   :  { %420 = verf.f32 %v278_v36  ;;  %v276_v39 = vmul.f32 0.70710677, %v260_v37  ;;  %v273_v51 = vmul.f32 0.5, %v260_v37 }
 0x1b4   :  { %v262_v40 = vpop.f32.mrf.mxu1 }
 0x1b5   :  { %422 = verf.f32 %v276_v39  ;;  %v263_v41 = vadd.f32 %v318_v32, %v262_v40 }
 0x1b7   :  { %v277_v42 = vmul.f32 0.70710677, %v263_v41  ;;  %v274_v52 = vmul.f32 0.5, %v263_v41 }
 0x1b9   :  { %424 = verf.f32 %v277_v42 }
 0x1c0   :  { %v421_v43 = vpop.eup %420 }
 0x1c1   :  { %v284_v45 = vadd.f32 1.0, %v421_v43 }
 0x1c2   :  { %v423_v46 = vpop.eup %422 }
 0x1c3   :  { %v287_v47 = vmul.f32 %v284_v45, %v275_v44  ;;  %v282_v49 = vadd.f32 1.0, %v423_v46 }
 0x1c5   :  { %v332_v48 = vpack.c.bf16 %v287_v47, %v287_v47  ;;  %v285_v54 = vmul.f32 %v282_v49, %v273_v51 }
 0x1c6   :  { %v425_v50 = vpop.eup %424 }
 0x1c7   :  { %303 = vst [vmem:[%s530_s5 + $0x8] sm:$0x3] %v332_v48  ;;  %v283_v53 = vadd.f32 1.0, %v425_v50 }
 0x1c9   :  { %v286_v55 = vmul.f32 %v283_v53, %v274_v52 }
 0x1cb   :  { %v340_v56 = vpack.c.bf16 %v286_v55, %v285_v54 }
 0x1cd   :  { %341 = vst [vmem:[%s530_s5] sm:$0xff] %v340_v56  }

// kernel: cybond_forward.7
= control target key start
LH: loop header
LB: loop body
LE: loop exit
PB: predicated region body
PF: predicated region fallthrough
CT: control target
= control target key end

     0   :  { %v375_v1 = vmov 0.0   ;;  %vm376_vm0 = vmmov 0   ;;  %s460_s0 = inlined_call_operand.vmem [shape: f32[2,128], index: 0, kind: input, shape index: {}]   ;;  %s461_s1 = inlined_call_operand.vmem [shape: bf16[128,128], index: 1, kind: input, shape index: {}]   ;;  %s462_s2 = inlined_call_operand.vmem [shape: f32[1,128], index: 2, kind: input, shape index: {}]   ;;  %s463_s3 = inlined_call_operand.vmem [shape: bf16[128,128], index: 3, kind: input, shape index: {}]   ;;  %s464_s4 = inlined_call_operand.hbm [shape: f32[2,128], index: 4, kind: output, shape index: {}]  }
   0x1   :  { %v335_v0 = vld [vmem:[%s461_s1 + $0x38] sm:$0xff]   ;;  %292 = vmatprep.subr.bf16.mxu0 %v375_v1  ;;  %312 = vmatprep.subr.bf16.mxu1 %v375_v1  ;;  %v336_v2 = vld [vmem:[%s461_s1 + $0x30] sm:$0xff]   ;;  %v337_v3 = vld [vmem:[%s461_s1 + $0x28] sm:$0xff]  }
   0x2   :  { %293 = vmatpush3.bf16.msra.mxu0 %v335_v0  ;;  %308 = vmatprep.mubr.msk.bf16.mxu0 %vm376_vm0, %v375_v1  ;;  %v343_v4 = vld [vmem:[%s463_s3 + $0x38] sm:$0xff]   ;;  %v338_v5 = vld [vmem:[%s461_s1 + $0x20] sm:$0xff]   ;;  %v344_v6 = vld [vmem:[%s463_s3 + $0x30] sm:$0xff]  }
   0x3   :  { %294 = vmatprep.subr.bf16.mxu0 %v375_v1  ;;  %328 = vmatprep.mubr.msk.bf16.mxu1 %vm376_vm0, %v375_v1  ;;  %v339_v7 = vld [vmem:[%s461_s1 + $0x18] sm:$0xff]  }
   0x4   :  { %313 = vmatpush3.bf16.msra.mxu1 %v343_v4 }
   0x5   :  { %314 = vmatprep.subr.bf16.mxu1 %v375_v1 }
   0x6   :  { %295 = vmatpush3.bf16.msra.mxu0 %v336_v2 }
   0x7   :  { %296 = vmatprep.subr.bf16.mxu0 %v375_v1 }
   0xa   :  { %297 = vmatpush3.bf16.msra.mxu0 %v337_v3 }
   0xb   :  { %298 = vmatprep.subr.bf16.mxu0 %v375_v1 }
   0xe   :  { %299 = vmatpush3.bf16.msra.mxu0 %v338_v5 }
   0xf   :  { %9 = vsyncpa [#allocation3], 0  ;;  %300 = vmatprep.subr.bf16.mxu0 %v375_v1  ;;  %315 = vmatpush3.bf16.msra.mxu1 %v344_v6  ;;  %v340_v8 = vld [vmem:[%s461_s1 + $0x10] sm:$0xff]   ;;  %v341_v9 = vld [vmem:[%s461_s1 + $0x8] sm:$0xff]  }
  0x10   :  { %316 = vmatprep.subr.bf16.mxu1 %v375_v1  ;;  %v342_v10 = vld [vmem:[%s461_s1] sm:$0xff]   ;;  %v345_v13 = vld [vmem:[%s463_s3 + $0x28] sm:$0xff]   ;;  %v347_v15 = vld [vmem:[%s463_s3 + $0x18] sm:$0xff]  }
  0x11   :  { %v19_v11 = vld [vmem:[%s460_s0] sm:$0x3]  ;;  %v348_v16 = vld [vmem:[%s463_s3 + $0x10] sm:$0xff]   ;;  %v349_v17 = vld [vmem:[%s463_s3 + $0x8] sm:$0xff]  }
  0x12   :  { %301 = vmatpush3.bf16.msra.mxu0 %v339_v7  ;;  %v20_v12 = vpack.c.bf16 %v19_v11, %v19_v11  ;;  %v346_v14 = vld [vmem:[%s463_s3 + $0x20] sm:$0xff]  }
  0x13   :  { %302 = vmatprep.subr.bf16.mxu0 %v375_v1  ;;  %317 = vmatpush3.bf16.msra.mxu1 %v345_v13  ;;  %v350_v18 = vld [vmem:[%s463_s3] sm:$0xff]   ;;  %s377_s3 = smov [#allocation2]  }
  0x14   :  { %318 = vmatprep.subr.bf16.mxu1 %v375_v1  ;;  %v257_v19 = vld [vmem:[%s462_s2] ss:$0 sm:$0xff]  ;;  %s249_s23 = sshll.u32 %s377_s3, 4  ;;  %s250_s23 = int_to_ptr.vmem [resolvable:$true] %s249_s23 }
  0x15   :  { %s353_s2 = scalar_lea.vmem %s250_s23, 32  ;;  %p358_p1 = scmp.lt.s32.totalorder %s250_s23, %s250_s23 }
  0x16   :  { %303 = vmatpush3.bf16.msra.mxu0 %v340_v8  ;;  %p354_p0 = scmp.ne.s32.totalorder %s250_s23, %s353_s2  ;;  %p359_p2 = scmp.lt.s32.totalorder %s353_s2, %s353_s2 }
  0x17   :  { %304 = vmatprep.subr.bf16.mxu0 %v375_v1  ;;  %319 = vmatpush3.bf16.msra.mxu1 %v346_v14 }
  0x18   :  { %320 = vmatprep.subr.bf16.mxu1 %v375_v1  ;;  %p360_p3 = por %p359_p2, %p358_p1 }
  0x1a   :  { %305 = vmatpush3.bf16.msra.mxu0 %v341_v9  ;;  %p361_p4 = pnand %p360_p3, %p354_p0 }
  0x1b   :  { %306 = vmatprep.subr.bf16.mxu0 %v375_v1  ;;  %321 = vmatpush3.bf16.msra.mxu1 %v347_v15 }
  0x1c   :  { %322 = vmatprep.subr.bf16.mxu1 %v375_v1 }
  0x1e   :  { %307 = vmatpush3.bf16.msra.mxu0 %v342_v10 }
  0x1f   :  { %323 = vmatpush3.bf16.msra.mxu1 %v348_v16 }
  0x20   :  { %324 = vmatprep.subr.bf16.mxu1 %v375_v1 }
  0x21   :  { %309 = vmatmul.mubr.bf16.vlgmr.msra.gmra.mxu0 %v20_v12 }
  0x23   :  { %325 = vmatpush3.bf16.msra.mxu1 %v349_v17 }
  0x24   :  { %326 = vmatprep.subr.bf16.mxu1 %v375_v1 }
  0x27   :  { %327 = vmatpush3.bf16.msra.mxu1 %v350_v18 }
  0xe1   :  { %v126_v20 = vpop.f32.mrf.mxu0 }
  0xe2   :  { %v127_v21 = vadd.f32 %v257_v19, %v126_v20 }
  0xe3   :  { %v310_v22 = vpop.f32.mrf.mxu0 }
  0xe4   :  { %v133_v23 = vmul.f32 0.70710677, %v127_v21  ;;  %v132_v27 = vmul.f32 0.5, %v127_v21 }
  0xe5   :  { %v129_v24 = vpop.f32.mrf.mxu0 }
  0xe6   :  { %351 = verf.f32 %v133_v23 }
  0xe7   :  { %v311_v25 = vpop.f32.mrf.mxu0 }
  0xf3   :  { %v352_v26 = vpop.eup %351 }
  0xf4   :  { %v135_v28 = vadd.f32 1.0, %v352_v26 }
  0xf6   :  { %v136_v29 = vmul.f32 %v135_v28, %v132_v27 }
  0xf8   :  { %v137_v30 = vpack.c.bf16 %v136_v29, %v136_v29 }
  0xfa   :  { %329 = vmatmul.mubr.bf16.vlgmr.msra.gmra.mxu1 %v137_v30 }
 0x1ba   :  { %v236_v31 = vpop.f32.mrf.mxu1 }
 0x1bb   :  { %242 = vst [vmem:[#allocation2] sm:$0x3] %v236_v31 }
 0x1bc   :  { %v330_v32 = vpop.f32.mrf.mxu1 }
 0x1bd   :  { %364 = shalt.err (!%p361_p4)
}
 0x1be   :  { %252 = dma.vmem_to_hbm [thread:$0]  %s250_s23, 32, %s464_s4, [#allocation3]   ;;  %v239_v33 = vpop.f32.mrf.mxu1 }
 0x1c0   :  { %v331_v34 = vpop.f32.mrf.mxu1 }
 0x1c1   :  { %373 = dma.done.wait [#allocation3], 32  }
 0x1c2   :  { %374 = vsyncadd [#allocation3], 4294967264 }
 0x1c3   :  { %256 = vsyncpa [#allocation3], 1 }

</bundles_post_ra>
